<compile_context>
chip_gen: v6e
topology: v6e:2x2x1
jax: 0.10.0
libtpu: 0.0.40
codegen_flags: <defaults>
</compile_context>

<pallas_src>
import jax
import jax.numpy as jnp
from jax import lax
from jax.experimental import pallas as pl
from jax.experimental.pallas import tpu as pltpu


def abcnn1_kernel(x1f_ref, x2f_ref, x1_ref, x2_ref, w1_ref, w2_ref,
                  out1_ref, out2_ref):
    TB, L, D = x1_ref.shape
    LD = L * D
    out_dtype = out1_ref.dtype
    f32 = jnp.float32

    # ---- channel 0 (pass-through): one unmasked lane-dense store per output.
    out1_ref[:, :LD] = x1f_ref[...].astype(out_dtype)
    out2_ref[:, :LD] = x2f_ref[...].astype(out_dtype)

    # ---- attention matrix A[b,i,j] = 1 / (1 + ||x1[b,i] - x2[b,j]||).
    x1v = x1_ref[...]                       # raw input dtype (bf16-friendly)
    x2v = x2_ref[...]
    xs1 = x1v.astype(f32)
    xs2 = x2v.astype(f32)
    sn1 = jnp.sum(xs1 * xs1, axis=-1)       # (TB, L) squared row norms
    sn2 = jnp.sum(xs2 * xs2, axis=-1)

    dn = (((2,), (2,)), ((0,), (0,)))       # 'bid,bjd->bij' (proven pattern)
    dots12 = lax.dot_general(x1v, x2v, dn, preferred_element_type=f32)

    sq = jnp.maximum(sn1[:, :, None] + sn2[:, None, :] - 2.0 * dots12, 0.0)
    # match_score == "euclidean": 1/(1+dist); reciprocal routed to the EUP.
    A12 = pl.reciprocal(1.0 + jnp.sqrt(sq), approx=True)      # (TB, L, L)

    # A^T via one batched identity matmul (MXU has huge slack here); this
    # replaces the previous duplicated dots/sq/sqrt/reciprocal chain.
    eye = jnp.equal(
        lax.broadcasted_iota(jnp.int32, (TB, L, L), 1),
        lax.broadcasted_iota(jnp.int32, (TB, L, L), 2)).astype(f32)
    A21 = lax.dot_general(eye, A12, dn, preferred_element_type=f32)  # A12^T

    # a1 = A @ W1, a2 = A^T @ W2 as single 2-D MXU matmuls over (TB*L, L).
    w1 = w1_ref[...].astype(f32)
    w2 = w2_ref[...].astype(f32)
    a1 = jnp.dot(A12.reshape(TB * L, L), w1,
                 preferred_element_type=f32).reshape(TB, L, D)
    a2 = jnp.dot(A21.reshape(TB * L, L), w2,
                 preferred_element_type=f32).reshape(TB, L, D)

    # ---- channel 1 (attention features) into the second LD columns of the
    # slab.  Per-row static slices (see TODO at top); L is trace-time.
    for i in range(L):
        lo = LD + i * D
        out1_ref[:, lo:lo + D] = a1[:, i, :].astype(out_dtype)
        out2_ref[:, lo:lo + D] = a2[:, i, :].astype(out_dtype)


def _pad_to(n, m):
    return ((n + m - 1) // m) * m


def _choose_block_b(B, L, D, in_itemsize, *,
                    max_block_bytes=8 << 20, min_grid=2):
    """Batch elements processed per grid step.

    Counts the real single-step VMEM footprint: double-buffered, lane-padded
    input/output blocks plus the f32 intermediates (the (TB, L, L) tiles are
    quadratic in L and lane-padded to 128, so they matter for large L).
    The default 8 MiB budget stays comfortably under the 32 MiB scoped VMEM
    default on v5e/v6e and under v7x's 64 MiB physical VMEM.  min_grid=2 keeps
    at least two grid steps so the "parallel" batch axis can shard across both
    v7x TensorCores; on single-TC v5e/v6e the extra step costs ~0.35 us, which
    is negligible (callers can pass min_grid=1 to force the largest block).
    """
    LD = L * D
    lane = 128
    Dp = _pad_to(D, lane)
    Lp = _pad_to(L, lane)
    LDp = _pad_to(LD, lane)
    slabp = _pad_to(2 * LD, lane)
    # Sublane multiple for the 2-D blocks whose second-to-last dim is TB.
    sub_mult = {4: 8, 2: 16, 1: 32}.get(in_itemsize, 8)

    def footprint(tb):
        # Pipeline blocks, double-buffered by Pallas (x2).
        io = 2 * (2 * tb * LDp * in_itemsize        # flat x1/x2 views
                  + 2 * tb * L * Dp * in_itemsize   # 3-D x1/x2 views
                  + 2 * tb * slabp * in_itemsize)   # two output slabs
        # f32 intermediates alive within one step (dots/sq/A/eye/A^T,
        # upcasts, a1/a2 in both shapes) -- generous count.
        inter = (6 * tb * L * Lp + 6 * tb * L * Dp) * 4
        return io + inter

    divisors = [d for d in range(1, B + 1) if B % d == 0]
    ok_shape = [d for d in divisors if d % sub_mult == 0 or d == B]
    fits = [d for d in ok_shape if footprint(d) <= max_block_bytes]
    if not fits:
        fits = [min(ok_shape, key=footprint)]
    pref = [d for d in fits if B // d >= min_grid]
    return max(pref) if pref else max(fits)


def abcnn1_attention(x1, x2, W1, W2, *, max_block_bytes=8 << 20, min_grid=2):
    """x1, x2: (B, 1, L, D)  ->  attn1, attn2: (B, 2, L, D)."""
    B, C, L, D = x1.shape
    assert C == 1, "ABCNN-1 attention expects a single input channel"
    LD = L * D
    isz = jnp.dtype(x1.dtype).itemsize
    TB = _choose_block_b(B, L, D, isz,
                         max_block_bytes=max_block_bytes, min_grid=min_grid)
    assert B % TB == 0
    out_dtype = x1.dtype

    # Free (contiguous) reshapes in the wrapper: a lane-dense 2-D view for the
    # pass-through copy and a 3-D view for the norm / Gram-matmul math.
    x1_f = x1.reshape(B, LD)
    x2_f = x2.reshape(B, LD)
    x1_3d = x1.reshape(B, L, D)
    x2_3d = x2.reshape(B, L, D)

    cost = pl.CostEstimate(
        flops=6 * B * L * L * D + 2 * B * L ** 3,
        transcendentals=2 * B * L * L,
        bytes_accessed=(8 * B * LD + 4 * LD) * isz,
    )

    out1, out2 = pl.pallas_call(
        abcnn1_kernel,
        out_shape=(jax.ShapeDtypeStruct((B, 2 * LD), out_dtype),
                   jax.ShapeDtypeStruct((B, 2 * LD), out_dtype)),
        grid_spec=pltpu.PrefetchScalarGridSpec(
            num_scalar_prefetch=0,
            grid=(B // TB,),
            in_specs=[
                pl.BlockSpec((TB, LD), lambda b: (b, 0)),       # x1 flat
                pl.BlockSpec((TB, LD), lambda b: (b, 0)),       # x2 flat
                pl.BlockSpec((TB, L, D), lambda b: (b, 0, 0)),  # x1 3-D
                pl.BlockSpec((TB, L, D), lambda b: (b, 0, 0)),  # x2 3-D
                # Weights are grid-invariant: constant block index keeps them
                # resident in VMEM across all batch steps (no re-DMA).
                pl.BlockSpec((L, D), lambda b: (0, 0)),
                pl.BlockSpec((L, D), lambda b: (0, 0)),
            ],
            out_specs=[
                pl.BlockSpec((TB, 2 * LD), lambda b: (b, 0)),
                pl.BlockSpec((TB, 2 * LD), lambda b: (b, 0)),
            ],
        ),
        compiler_params=pltpu.CompilerParams(
            dimension_semantics=("parallel",)),
        cost_estimate=cost,
    )(x1_f, x2_f, x1_3d, x2_3d, W1, W2)

    # Free reshapes: each slab row is [x_k | a_k] -> channels (x_k, a_k).
    return out1.reshape(B, 2, L, D), out2.reshape(B, 2, L, D)


def _reference(x1, x2, W1, W2):
    # Pure-JAX reference for sanity checking.
    a = x1[:, 0]                                          # (B, L, D)
    b = x2[:, 0]
    d = jnp.sqrt(jnp.maximum(
        jnp.sum((a[:, :, None, :] - b[:, None, :, :]) ** 2, axis=-1), 0.0))
    A = 1.0 / (1.0 + d)                                   # (B, L, L)
    a1 = jnp.einsum('bij,jd->bid', A, W1)
    a2 = jnp.einsum('bji,jd->bid', A, W2)
    return (jnp.concatenate([x1, a1[:, None]], axis=1),
            jnp.concatenate([x2, a2[:, None]], axis=1))


if __name__ == "__main__":
    B, L, D = 16, 8, 32         # batch, max_length, input_size
    share_weights = True        # module option; weights are shared when True

    key = jax.random.PRNGKey(0)
    k1, k2, k3, k4 = jax.random.split(key, 4)
    x1 = jax.random.normal(k1, (B, 1, L, D), dtype=jnp.float32)
    x2 = jax.random.normal(k2, (B, 1, L, D), dtype=jnp.float32)
    W = jax.random.normal(k3, (L, D), dtype=jnp.float32) * 0.1
    W1 = W if share_weights else jax.random.normal(k3, (L, D), jnp.float32) * 0.1
    W2 = W if share_weights else jax.random.normal(k4, (L, D), jnp.float32) * 0.1

    attn1, attn2 = jax.jit(abcnn1_attention)(x1, x2, W1, W2)
    jax.block_until_ready((attn1, attn2))

    r1, r2 = _reference(x1, x2, W1, W2)
    assert attn1.shape == (B, 2, L, D) and attn2.shape == (B, 2, L, D)
    # Tolerance covers the EUP approximate reciprocal (and MXU f32 rounding);
    # use approx=False / an explicit divide if bit-level parity is required.
    assert jnp.allclose(attn1, r1, atol=5e-3, rtol=5e-3)
    assert jnp.allclose(attn2, r2, atol=5e-3, rtol=5e-3)

    print("KERNEL_OK")
</pallas_src>

<mosaic_0001>
module attributes {stable_mosaic.version = 11 : i64} {
  func.func @abcnn1_kernel(%arg0: i32, %arg1: memref<8x256xf32, #tpu.memory_space<vmem>>, %arg2: memref<8x256xf32, #tpu.memory_space<vmem>>, %arg3: memref<8x8x32xf32, #tpu.memory_space<vmem>>, %arg4: memref<8x8x32xf32, #tpu.memory_space<vmem>>, %arg5: memref<8x32xf32, #tpu.memory_space<vmem>>, %arg6: memref<8x32xf32, #tpu.memory_space<vmem>>, %arg7: memref<8x512xf32, #tpu.memory_space<vmem>>, %arg8: memref<8x512xf32, #tpu.memory_space<vmem>>) attributes {dimension_semantics = [#tpu.dimension_semantics<parallel>], iteration_bounds = array<i64: 2>, scalar_prefetch = 0 : i64, scratch_operands = 0 : i64, tpu.core_type = #tpu.core_type<tc>, window_params = [{transform_indices = @transform_0, window_bounds = array<i64: 8, 256>}, {transform_indices = @transform_1, window_bounds = array<i64: 8, 256>}, {transform_indices = @transform_2, window_bounds = array<i64: 8, 8, 32>}, {transform_indices = @transform_3, window_bounds = array<i64: 8, 8, 32>}, {pipeline_mode = #tpu.pipeline_mode<synchronous>, transform_indices = @transform_4, window_bounds = array<i64: 8, 32>}, {pipeline_mode = #tpu.pipeline_mode<synchronous>, transform_indices = @transform_5, window_bounds = array<i64: 8, 32>}, {transform_indices = @transform_6, window_bounds = array<i64: 8, 512>}, {transform_indices = @transform_7, window_bounds = array<i64: 8, 512>}]} {
    %c0 = arith.constant 0 : index
    %c0_0 = arith.constant 0 : index
    %0 = vector.load %arg1[%c0, %c0_0] : memref<8x256xf32, #tpu.memory_space<vmem>>, vector<8x256xf32>
    %c0_1 = arith.constant 0 : index
    %c0_2 = arith.constant 0 : index
    %1 = vector.load %arg7[%c0_1, %c0_2] : memref<8x512xf32, #tpu.memory_space<vmem>>, vector<8x256xf32>
    tpu.vector_store %arg7[%c0_1, %c0_2], %0 {strides = array<i32>} : memref<8x512xf32, #tpu.memory_space<vmem>>, vector<8x256xf32>,
    %c0_3 = arith.constant 0 : index
    %c0_4 = arith.constant 0 : index
    %2 = vector.load %arg2[%c0_3, %c0_4] : memref<8x256xf32, #tpu.memory_space<vmem>>, vector<8x256xf32>
    %c0_5 = arith.constant 0 : index
    %c0_6 = arith.constant 0 : index
    %3 = vector.load %arg8[%c0_5, %c0_6] : memref<8x512xf32, #tpu.memory_space<vmem>>, vector<8x256xf32>
    tpu.vector_store %arg8[%c0_5, %c0_6], %2 {strides = array<i32>} : memref<8x512xf32, #tpu.memory_space<vmem>>, vector<8x256xf32>,
    %c0_7 = arith.constant 0 : index
    %c0_8 = arith.constant 0 : index
    %c0_9 = arith.constant 0 : index
    %4 = vector.load %arg3[%c0_7, %c0_8, %c0_9] : memref<8x8x32xf32, #tpu.memory_space<vmem>>, vector<8x8x32xf32>
    %c0_10 = arith.constant 0 : index
    %c0_11 = arith.constant 0 : index
    %c0_12 = arith.constant 0 : index
    %5 = vector.load %arg4[%c0_10, %c0_11, %c0_12] : memref<8x8x32xf32, #tpu.memory_space<vmem>>, vector<8x8x32xf32>
    %6 = arith.mulf %4, %4 : vector<8x8x32xf32>
    %cst = arith.constant dense<0.000000e+00> : vector<8x8xf32>
    %7 = vector.multi_reduction <add>, %6, %cst [2] : vector<8x8x32xf32> to vector<8x8xf32>
    %8 = arith.mulf %5, %5 : vector<8x8x32xf32>
    %cst_13 = arith.constant dense<0.000000e+00> : vector<8x8xf32>
    %9 = vector.multi_reduction <add>, %8, %cst_13 [2] : vector<8x8x32xf32> to vector<8x8xf32>
    %cst_14 = arith.constant dense<0.000000e+00> : vector<8x8x8xf32>
    %10 = tpu.matmul %4, %5, %cst_14 {dimension_numbers = #tpu.dot_dimension_numbers<[2], [2], [1], [1], [0, 0, 0, 1, 1, 1], [0], [0]>} : vector<8x8x32xf32>, vector<8x8x32xf32>, vector<8x8x8xf32> -> vector<8x8x8xf32>
    %11 = vector.shape_cast %7 : vector<8x8xf32> to vector<8x8x1xf32>
    %12 = vector.shape_cast %9 : vector<8x8xf32> to vector<8x1x8xf32>
    %13 = vector.broadcast %11 : vector<8x8x1xf32> to vector<8x8x8xf32>
    %14 = vector.broadcast %12 : vector<8x1x8xf32> to vector<8x8x8xf32>
    %15 = arith.addf %13, %14 : vector<8x8x8xf32>
    %cst_15 = arith.constant 2.000000e+00 : f32
    %16 = vector.broadcast %cst_15 : f32 to vector<8x8x8xf32>
    %17 = arith.mulf %16, %10 : vector<8x8x8xf32>
    %18 = arith.subf %15, %17 : vector<8x8x8xf32>
    %cst_16 = arith.constant 0.000000e+00 : f32
    %19 = vector.broadcast %cst_16 : f32 to vector<8x8x8xf32>
    %20 = arith.maximumf %18, %19 : vector<8x8x8xf32>
    %21 = math.sqrt %20 : vector<8x8x8xf32>
    %cst_17 = arith.constant 1.000000e+00 : f32
    %22 = vector.broadcast %cst_17 : f32 to vector<8x8x8xf32>
    %23 = arith.addf %22, %21 : vector<8x8x8xf32>
    %24 = tpu.reciprocal %23 {approx = true} : vector<8x8x8xf32> -> vector<8x8x8xf32>
    %25 = tpu.iota {dimensions = array<i32: 1>} : vector<8x8x8xi32>
    %26 = tpu.iota {dimensions = array<i32: 2>} : vector<8x8x8xi32>
    %27 = arith.cmpi eq, %25, %26 : vector<8x8x8xi32>
    %28 = arith.extui %27 : vector<8x8x8xi1> to vector<8x8x8xi32>
    %29 = arith.sitofp %28 : vector<8x8x8xi32> to vector<8x8x8xf32>
    %cst_18 = arith.constant dense<0.000000e+00> : vector<8x8x8xf32>
    %30 = tpu.matmul %29, %24, %cst_18 {dimension_numbers = #tpu.dot_dimension_numbers<[2], [2], [1], [1], [0, 0, 0, 1, 1, 1], [0], [0]>} : vector<8x8x8xf32>, vector<8x8x8xf32>, vector<8x8x8xf32> -> vector<8x8x8xf32>
    %c0_19 = arith.constant 0 : index
    %c0_20 = arith.constant 0 : index
    %31 = vector.load %arg5[%c0_19, %c0_20] : memref<8x32xf32, #tpu.memory_space<vmem>>, vector<8x32xf32>
    %c0_21 = arith.constant 0 : index
    %c0_22 = arith.constant 0 : index
    %32 = vector.load %arg6[%c0_21, %c0_22] : memref<8x32xf32, #tpu.memory_space<vmem>>, vector<8x32xf32>
    %33 = vector.shape_cast %24 : vector<8x8x8xf32> to vector<64x8xf32>
    %cst_23 = arith.constant dense<0.000000e+00> : vector<64x32xf32>
    %34 = tpu.matmul %33, %31, %cst_23 {dimension_numbers = #tpu.dot_dimension_numbers<[1], [0], [0], [1], [0, 0, 1, 1], [], []>} : vector<64x8xf32>, vector<8x32xf32>, vector<64x32xf32> -> vector<64x32xf32>
    %35 = vector.shape_cast %34 : vector<64x32xf32> to vector<8x8x32xf32>
    %36 = vector.shape_cast %30 : vector<8x8x8xf32> to vector<64x8xf32>
    %cst_24 = arith.constant dense<0.000000e+00> : vector<64x32xf32>
    %37 = tpu.matmul %36, %32, %cst_24 {dimension_numbers = #tpu.dot_dimension_numbers<[1], [0], [0], [1], [0, 0, 1, 1], [], []>} : vector<64x8xf32>, vector<8x32xf32>, vector<64x32xf32> -> vector<64x32xf32>
    %38 = vector.shape_cast %37 : vector<64x32xf32> to vector<8x8x32xf32>
    %39 = vector.extract_strided_slice %35 {offsets = [0, 0, 0], sizes = [8, 1, 32], strides = [1, 1, 1]} : vector<8x8x32xf32> to vector<8x1x32xf32>
    %40 = vector.shape_cast %39 : vector<8x1x32xf32> to vector<8x32xf32>
    %c0_25 = arith.constant 0 : index
    %c256 = arith.constant 256 : index
    %41 = vector.load %arg7[%c0_25, %c256] : memref<8x512xf32, #tpu.memory_space<vmem>>, vector<8x32xf32>
    tpu.vector_store %arg7[%c0_25, %c256], %40 {strides = array<i32>} : memref<8x512xf32, #tpu.memory_space<vmem>>, vector<8x32xf32>,
    %42 = vector.extract_strided_slice %38 {offsets = [0, 0, 0], sizes = [8, 1, 32], strides = [1, 1, 1]} : vector<8x8x32xf32> to vector<8x1x32xf32>
    %43 = vector.shape_cast %42 : vector<8x1x32xf32> to vector<8x32xf32>
    %c0_26 = arith.constant 0 : index
    %c256_27 = arith.constant 256 : index
    %44 = vector.load %arg8[%c0_26, %c256_27] : memref<8x512xf32, #tpu.memory_space<vmem>>, vector<8x32xf32>
    tpu.vector_store %arg8[%c0_26, %c256_27], %43 {strides = array<i32>} : memref<8x512xf32, #tpu.memory_space<vmem>>, vector<8x32xf32>,
    %45 = vector.extract_strided_slice %35 {offsets = [0, 1, 0], sizes = [8, 1, 32], strides = [1, 1, 1]} : vector<8x8x32xf32> to vector<8x1x32xf32>
    %46 = vector.shape_cast %45 : vector<8x1x32xf32> to vector<8x32xf32>
    %c0_28 = arith.constant 0 : index
    %c288 = arith.constant 288 : index
    %47 = vector.load %arg7[%c0_28, %c288] : memref<8x512xf32, #tpu.memory_space<vmem>>, vector<8x32xf32>
    tpu.vector_store %arg7[%c0_28, %c288], %46 {strides = array<i32>} : memref<8x512xf32, #tpu.memory_space<vmem>>, vector<8x32xf32>,
    %48 = vector.extract_strided_slice %38 {offsets = [0, 1, 0], sizes = [8, 1, 32], strides = [1, 1, 1]} : vector<8x8x32xf32> to vector<8x1x32xf32>
    %49 = vector.shape_cast %48 : vector<8x1x32xf32> to vector<8x32xf32>
    %c0_29 = arith.constant 0 : index
    %c288_30 = arith.constant 288 : index
    %50 = vector.load %arg8[%c0_29, %c288_30] : memref<8x512xf32, #tpu.memory_space<vmem>>, vector<8x32xf32>
    tpu.vector_store %arg8[%c0_29, %c288_30], %49 {strides = array<i32>} : memref<8x512xf32, #tpu.memory_space<vmem>>, vector<8x32xf32>,
    %51 = vector.extract_strided_slice %35 {offsets = [0, 2, 0], sizes = [8, 1, 32], strides = [1, 1, 1]} : vector<8x8x32xf32> to vector<8x1x32xf32>
    %52 = vector.shape_cast %51 : vector<8x1x32xf32> to vector<8x32xf32>
    %c0_31 = arith.constant 0 : index
    %c320 = arith.constant 320 : index
    %53 = vector.load %arg7[%c0_31, %c320] : memref<8x512xf32, #tpu.memory_space<vmem>>, vector<8x32xf32>
    tpu.vector_store %arg7[%c0_31, %c320], %52 {strides = array<i32>} : memref<8x512xf32, #tpu.memory_space<vmem>>, vector<8x32xf32>,
    %54 = vector.extract_strided_slice %38 {offsets = [0, 2, 0], sizes = [8, 1, 32], strides = [1, 1, 1]} : vector<8x8x32xf32> to vector<8x1x32xf32>
    %55 = vector.shape_cast %54 : vector<8x1x32xf32> to vector<8x32xf32>
    %c0_32 = arith.constant 0 : index
    %c320_33 = arith.constant 320 : index
    %56 = vector.load %arg8[%c0_32, %c320_33] : memref<8x512xf32, #tpu.memory_space<vmem>>, vector<8x32xf32>
    tpu.vector_store %arg8[%c0_32, %c320_33], %55 {strides = array<i32>} : memref<8x512xf32, #tpu.memory_space<vmem>>, vector<8x32xf32>,
    %57 = vector.extract_strided_slice %35 {offsets = [0, 3, 0], sizes = [8, 1, 32], strides = [1, 1, 1]} : vector<8x8x32xf32> to vector<8x1x32xf32>
    %58 = vector.shape_cast %57 : vector<8x1x32xf32> to vector<8x32xf32>
    %c0_34 = arith.constant 0 : index
    %c352 = arith.constant 352 : index
    %59 = vector.load %arg7[%c0_34, %c352] : memref<8x512xf32, #tpu.memory_space<vmem>>, vector<8x32xf32>
    tpu.vector_store %arg7[%c0_34, %c352], %58 {strides = array<i32>} : memref<8x512xf32, #tpu.memory_space<vmem>>, vector<8x32xf32>,
    %60 = vector.extract_strided_slice %38 {offsets = [0, 3, 0], sizes = [8, 1, 32], strides = [1, 1, 1]} : vector<8x8x32xf32> to vector<8x1x32xf32>
    %61 = vector.shape_cast %60 : vector<8x1x32xf32> to vector<8x32xf32>
    %c0_35 = arith.constant 0 : index
    %c352_36 = arith.constant 352 : index
    %62 = vector.load %arg8[%c0_35, %c352_36] : memref<8x512xf32, #tpu.memory_space<vmem>>, vector<8x32xf32>
    tpu.vector_store %arg8[%c0_35, %c352_36], %61 {strides = array<i32>} : memref<8x512xf32, #tpu.memory_space<vmem>>, vector<8x32xf32>,
    %63 = vector.extract_strided_slice %35 {offsets = [0, 4, 0], sizes = [8, 1, 32], strides = [1, 1, 1]} : vector<8x8x32xf32> to vector<8x1x32xf32>
    %64 = vector.shape_cast %63 : vector<8x1x32xf32> to vector<8x32xf32>
    %c0_37 = arith.constant 0 : index
    %c384 = arith.constant 384 : index
    %65 = vector.load %arg7[%c0_37, %c384] : memref<8x512xf32, #tpu.memory_space<vmem>>, vector<8x32xf32>
    tpu.vector_store %arg7[%c0_37, %c384], %64 {strides = array<i32>} : memref<8x512xf32, #tpu.memory_space<vmem>>, vector<8x32xf32>,
    %66 = vector.extract_strided_slice %38 {offsets = [0, 4, 0], sizes = [8, 1, 32], strides = [1, 1, 1]} : vector<8x8x32xf32> to vector<8x1x32xf32>
    %67 = vector.shape_cast %66 : vector<8x1x32xf32> to vector<8x32xf32>
    %c0_38 = arith.constant 0 : index
    %c384_39 = arith.constant 384 : index
    %68 = vector.load %arg8[%c0_38, %c384_39] : memref<8x512xf32, #tpu.memory_space<vmem>>, vector<8x32xf32>
    tpu.vector_store %arg8[%c0_38, %c384_39], %67 {strides = array<i32>} : memref<8x512xf32, #tpu.memory_space<vmem>>, vector<8x32xf32>,
    %69 = vector.extract_strided_slice %35 {offsets = [0, 5, 0], sizes = [8, 1, 32], strides = [1, 1, 1]} : vector<8x8x32xf32> to vector<8x1x32xf32>
    %70 = vector.shape_cast %69 : vector<8x1x32xf32> to vector<8x32xf32>
    %c0_40 = arith.constant 0 : index
    %c416 = arith.constant 416 : index
    %71 = vector.load %arg7[%c0_40, %c416] : memref<8x512xf32, #tpu.memory_space<vmem>>, vector<8x32xf32>
    tpu.vector_store %arg7[%c0_40, %c416], %70 {strides = array<i32>} : memref<8x512xf32, #tpu.memory_space<vmem>>, vector<8x32xf32>,
    %72 = vector.extract_strided_slice %38 {offsets = [0, 5, 0], sizes = [8, 1, 32], strides = [1, 1, 1]} : vector<8x8x32xf32> to vector<8x1x32xf32>
    %73 = vector.shape_cast %72 : vector<8x1x32xf32> to vector<8x32xf32>
    %c0_41 = arith.constant 0 : index
    %c416_42 = arith.constant 416 : index
    %74 = vector.load %arg8[%c0_41, %c416_42] : memref<8x512xf32, #tpu.memory_space<vmem>>, vector<8x32xf32>
    tpu.vector_store %arg8[%c0_41, %c416_42], %73 {strides = array<i32>} : memref<8x512xf32, #tpu.memory_space<vmem>>, vector<8x32xf32>,
    %75 = vector.extract_strided_slice %35 {offsets = [0, 6, 0], sizes = [8, 1, 32], strides = [1, 1, 1]} : vector<8x8x32xf32> to vector<8x1x32xf32>
    %76 = vector.shape_cast %75 : vector<8x1x32xf32> to vector<8x32xf32>
    %c0_43 = arith.constant 0 : index
    %c448 = arith.constant 448 : index
    %77 = vector.load %arg7[%c0_43, %c448] : memref<8x512xf32, #tpu.memory_space<vmem>>, vector<8x32xf32>
    tpu.vector_store %arg7[%c0_43, %c448], %76 {strides = array<i32>} : memref<8x512xf32, #tpu.memory_space<vmem>>, vector<8x32xf32>,
    %78 = vector.extract_strided_slice %38 {offsets = [0, 6, 0], sizes = [8, 1, 32], strides = [1, 1, 1]} : vector<8x8x32xf32> to vector<8x1x32xf32>
    %79 = vector.shape_cast %78 : vector<8x1x32xf32> to vector<8x32xf32>
    %c0_44 = arith.constant 0 : index
    %c448_45 = arith.constant 448 : index
    %80 = vector.load %arg8[%c0_44, %c448_45] : memref<8x512xf32, #tpu.memory_space<vmem>>, vector<8x32xf32>
    tpu.vector_store %arg8[%c0_44, %c448_45], %79 {strides = array<i32>} : memref<8x512xf32, #tpu.memory_space<vmem>>, vector<8x32xf32>,
    %81 = vector.extract_strided_slice %35 {offsets = [0, 7, 0], sizes = [8, 1, 32], strides = [1, 1, 1]} : vector<8x8x32xf32> to vector<8x1x32xf32>
    %82 = vector.shape_cast %81 : vector<8x1x32xf32> to vector<8x32xf32>
    %c0_46 = arith.constant 0 : index
    %c480 = arith.constant 480 : index
    %83 = vector.load %arg7[%c0_46, %c480] : memref<8x512xf32, #tpu.memory_space<vmem>>, vector<8x32xf32>
    tpu.vector_store %arg7[%c0_46, %c480], %82 {strides = array<i32>} : memref<8x512xf32, #tpu.memory_space<vmem>>, vector<8x32xf32>,
    %84 = vector.extract_strided_slice %38 {offsets = [0, 7, 0], sizes = [8, 1, 32], strides = [1, 1, 1]} : vector<8x8x32xf32> to vector<8x1x32xf32>
    %85 = vector.shape_cast %84 : vector<8x1x32xf32> to vector<8x32xf32>
    %c0_47 = arith.constant 0 : index
    %c480_48 = arith.constant 480 : index
    %86 = vector.load %arg8[%c0_47, %c480_48] : memref<8x512xf32, #tpu.memory_space<vmem>>, vector<8x32xf32>
    tpu.vector_store %arg8[%c0_47, %c480_48], %85 {strides = array<i32>} : memref<8x512xf32, #tpu.memory_space<vmem>>, vector<8x32xf32>,
    return
  }
  func.func @transform_0(%arg0: i32) -> (i32, i32) {
    %c0_i32 = arith.constant 0 : i32
    %c0_i32_0 = arith.constant 0 : i32
    return %arg0, %c0_i32 : i32, i32
  }
  func.func @transform_1(%arg0: i32) -> (i32, i32) {
    %c0_i32 = arith.constant 0 : i32
    %c0_i32_0 = arith.constant 0 : i32
    return %arg0, %c0_i32 : i32, i32
  }
  func.func @transform_2(%arg0: i32) -> (i32, i32, i32) {
    %c0_i32 = arith.constant 0 : i32
    %c0_i32_0 = arith.constant 0 : i32
    %c0_i32_1 = arith.constant 0 : i32
    return %arg0, %c0_i32, %c0_i32_0 : i32, i32, i32
  }
  func.func @transform_3(%arg0: i32) -> (i32, i32, i32) {
    %c0_i32 = arith.constant 0 : i32
    %c0_i32_0 = arith.constant 0 : i32
    %c0_i32_1 = arith.constant 0 : i32
    return %arg0, %c0_i32, %c0_i32_0 : i32, i32, i32
  }
  func.func @transform_4(%arg0: i32) -> (i32, i32) {
    %c0_i32 = arith.constant 0 : i32
    %c0_i32_0 = arith.constant 0 : i32
    %c0_i32_1 = arith.constant 0 : i32
    return %c0_i32, %c0_i32_0 : i32, i32
  }
  func.func @transform_5(%arg0: i32) -> (i32, i32) {
    %c0_i32 = arith.constant 0 : i32
    %c0_i32_0 = arith.constant 0 : i32
    %c0_i32_1 = arith.constant 0 : i32
    return %c0_i32, %c0_i32_0 : i32, i32
  }
  func.func @transform_6(%arg0: i32) -> (i32, i32) {
    %c0_i32 = arith.constant 0 : i32
    %c0_i32_0 = arith.constant 0 : i32
    return %arg0, %c0_i32 : i32, i32
  }
  func.func @transform_7(%arg0: i32) -> (i32, i32) {
    %c0_i32 = arith.constant 0 : i32
    %c0_i32_0 = arith.constant 0 : i32
    return %arg0, %c0_i32 : i32, i32
  }
}

</mosaic_0001>

<bundles_post_ra>
// kernel: abcnn1_attention.1
= control target key start
LH: loop header
LB: loop body
LE: loop exit
PB: predicated region body
PF: predicated region fallthrough
CT: control target
= control target key end

     0   :  { %s2842_s24 = smov 0   ;;  %s3409_s0 = inlined_call_operand.vmem [shape: f32[16,256], index: 0, kind: input, shape index: {}]   ;;  %s3410_s1 = inlined_call_operand.vmem [shape: f32[16,256], index: 1, kind: input, shape index: {}]   ;;  %s3411_s2 = inlined_call_operand.vmem [shape: f32[16,8,32], index: 2, kind: input, shape index: {}]   ;;  %s3412_s3 = inlined_call_operand.vmem [shape: f32[16,8,32], index: 3, kind: input, shape index: {}]   ;;  %s3413_s4 = inlined_call_operand.vmem [shape: f32[8,32], index: 4, kind: input, shape index: {}]   ;;  %s3414_s5 = inlined_call_operand.vmem [shape: f32[8,32], index: 5, kind: input, shape index: {}]   ;;  %s3415_s6 = inlined_call_operand.vmem [shape: f32[16,512], index: 6, kind: output, shape index: {0}]   ;;  %s3416_s7 = inlined_call_operand.vmem [shape: f32[16,512], index: 7, kind: output, shape index: {1}]  }
   0x1 LB: > { %s2848_s25 = sadd.s32 4294967295, %s2795_s24   ;;  %p2518_p0 = scmp.ge.s32.totalorder %s2795_s24, 1  ;;  %s2795_s24 = sphi %s2842_s24, %s18_s24  }
   0x2   : > { %p272_p1 = scmp.lt.s32.totalorder %s2795_s24, 3 }
   0x4   : > { %p273_p2 = pnand %p2518_p0, %p272_p1 }
   0x5   : > { %s2523_s26 = sshll.u32 (!%p273_p2), %s2848_s25, 3  ;;  %p324_p4 = scmp.lt.s32.totalorder (!%p273_p2), %s2848_s25, 1 }
   0x6   : > { %276 = sbr.rel (%p273_p2) target bundleno = 795 (0x31b), region = 44  ;;  %p335_p3 = scmp.lt.s32.totalorder (!%p273_p2), %s2523_s26, 15 }
   0x7   : > { %s2799_s23 = smov (!%p273_p2), 64  }
   0xb   : > { %v2797_v0 = vmov 0.0   ;;  %vm2798_vm0 = vmmov 0   ;;  %s3418_s26 = smov (!%p335_p3, %s2523_s26), 15  ;;  %vm388_vm1 = vcmask 261120   ;;  %v1061_v55 = vlaneseq  ;;  %s3420_s25 = smov (!%p324_p4, %s2848_s25), 1 }
   0xc   : > { %2636 = vmatprep.subr.mxu0 %v2797_v0  ;;  %2641 = vmatprep.subr.mxu1 %v2797_v0  ;;  %s2524_s27 = sshll.u32 %s3418_s26, 3  ;;  %vm1267_vm14 = vcmask 64512   ;;  %s2584_s15 = sshll.u32 %s3420_s25, 5 }
   0xd   : > { %2638 = vmatprep.mubr.msk.f32.mxu0 %vm2798_vm0, %v2797_v0  ;;  %2643 = vmatprep.mubr.msk.f32.mxu1 %vm2798_vm0, %v2797_v0  ;;  %s2862_s30 = scalar_lea.vmem %s3412_s3, %s2524_s27  ;;  %s2867_s10 = scalar_lea.vmem %s3411_s2, %s2524_s27  ;;  %v2941_v57 = vand.u32 127, %v1061_v55  ;;  %v2943_v58 = vshrl.u32 %v1061_v55, 7 }
   0xe   : > { %v372_v1 = vld [vmem:[%s2862_s30] sm:$0xff]  ;;  %v373_v2 = vld [vmem:[%s2862_s30 + $0x8] sm:$0xff]  ;;  %v374_v5 = vld [vmem:[%s2862_s30 + $0x10] sm:$0xff]  ;;  %s2582_s16 = sshll.u32 %s3420_s25, 4  ;;  %s3101_s22 = scalar_lea.vmem %s3415_s6, %s2584_s15 }
   0xf   : > { %2637 = vmatpush3.xpose.msk.msra.mxu0 %vm388_vm1, %v372_v1  ;;  %2642 = vmatpush3.xpose.msk.msra.mxu1 %vm388_vm1, %v373_v2  ;;  %v364_v3 = vld [vmem:[%s2867_s10] sm:$0xff]  ;;  %v365_v4 = vld [vmem:[%s2867_s10 + $0x8] sm:$0xff]  ;;  %v375_v6 = vld [vmem:[%s2862_s30 + $0x18] sm:$0xff]  ;;  %v413_v11 = vmul.f32 %v372_v1, %v372_v1  ;;  %v414_v19 = vmul.f32 %v373_v2, %v373_v2  ;;  %v415_v25 = vmul.f32 %v374_v5, %v374_v5  ;;  %s328_s19 = scalar_lea.vmem %s3409_s0, %s2582_s16  ;;  %s2800_s26 = smov 32  }
  0x10   : > { %2646 = vmatprep.subr.mxu0 %v2797_v0  ;;  %2651 = vmatprep.subr.mxu1 %v2797_v0  ;;  %v366_v7 = vld [vmem:[%s2867_s10 + $0x10] sm:$0xff]  ;;  %v367_v8 = vld [vmem:[%s2867_s10 + $0x18] sm:$0xff]  ;;  %v376_v9 = vld [vmem:[%s2862_s30 + $0x20] sm:$0xff]  ;;  %v380_v12 = vmul.f32 %v364_v3, %v364_v3  ;;  %v381_v20 = vmul.f32 %v365_v4, %v365_v4  ;;  %v416_v26 = vmul.f32 %v375_v6, %v375_v6  ;;  %s2801_s27 = smov 96  }
  0x11   : > { %v377_v10 = vld [vmem:[%s2862_s30 + $0x28] sm:$0xff]  ;;  %v368_v13 = vld [vmem:[%s2867_s10 + $0x20] sm:$0xff]  ;;  %v378_v15 = vld [vmem:[%s2862_s30 + $0x30] sm:$0xff]  ;;  %v421_v17 = vsel %vm388_vm1, %v413_v11, 0.0  ;;  %v424_v23 = vsel %vm388_vm1, %v414_v19, 0.0  ;;  %v427_v27 = vsel %vm388_vm1, %v415_v25, 0.0  ;;  %v382_v29 = vmul.f32 %v366_v7, %v366_v7 }
  0x12   : > { %2639 = vmatmul.mubr.msk.f32.vlgmr.msra.gmra.mxu0 %vm388_vm1, %v364_v3  ;;  %2644 = vmatmul.mubr.msk.f32.vlgmr.msra.gmra.mxu1 %vm388_vm1, %v365_v4  ;;  %v369_v14 = vld [vmem:[%s2867_s10 + $0x28] sm:$0xff]  ;;  %v379_v16 = vld [vmem:[%s2862_s30 + $0x38] sm:$0xff]  ;;  %v389_v18 = vsel %vm388_vm1, %v380_v12, 0.0  ;;  %v370_v21 = vld [vmem:[%s2867_s10 + $0x30] sm:$0xff]  ;;  %v392_v24 = vsel %vm388_vm1, %v381_v20, 0.0  ;;  %v430_v28 = vsel %vm388_vm1, %v416_v26, 0.0  ;;  %v383_v30 = vmul.f32 %v367_v8, %v367_v8  ;;  %s333_s30 = scalar_lea.vmem %s3410_s1, %s2582_s16 }
  0x13   : > { %2647 = vmatpush3.xpose.msk.msra.mxu0 %vm388_vm1, %v374_v5  ;;  %2652 = vmatpush3.xpose.msk.msra.mxu1 %vm388_vm1, %v375_v6  ;;  %v371_v22 = vld [vmem:[%s2867_s10 + $0x38] sm:$0xff]  ;;  %v395_v31 = vsel %vm388_vm1, %v382_v29, 0.0  ;;  %v417_v33 = vmul.f32 %v376_v9, %v376_v9  ;;  %v418_v34 = vmul.f32 %v377_v10, %v377_v10  ;;  %v384_v37 = vmul.f32 %v368_v13, %v368_v13  ;;  %s3246_s10 = scalar_lea.vmem %s3416_s7, %s2584_s15 }
  0x14   : > { %2648 = vmatprep.mubr.msk.f32.mxu0 %vm2798_vm0, %v2797_v0  ;;  %2653 = vmatprep.mubr.msk.f32.mxu1 %vm2798_vm0, %v2797_v0  ;;  %v398_v32 = vsel %vm388_vm1, %v383_v30, 0.0  ;;  %v385_v38 = vmul.f32 %v369_v14, %v369_v14  ;;  %v419_v41 = vmul.f32 %v378_v15, %v378_v15  ;;  %v420_v42 = vmul.f32 %v379_v16, %v379_v16 }
  0x15   : > { %2656 = vmatprep.subr.mxu0 %v2797_v0  ;;  %2661 = vmatprep.subr.mxu1 %v2797_v0  ;;  %v433_v35 = vsel %vm388_vm1, %v417_v33, 0.0  ;;  %v436_v36 = vsel %vm388_vm1, %v418_v34, 0.0  ;;  %v401_v39 = vsel %vm388_vm1, %v384_v37, 0.0  ;;  %v386_v45 = vmul.f32 %v370_v21, %v370_v21 }
  0x16   : > { %2649 = vmatmul.mubr.msk.f32.vlgmr.msra.gmra.mxu0 %vm388_vm1, %v366_v7  ;;  %2654 = vmatmul.mubr.msk.f32.vlgmr.msra.gmra.mxu1 %vm388_vm1, %v367_v8  ;;  %v404_v40 = vsel %vm388_vm1, %v385_v38, 0.0  ;;  %v439_v43 = vsel %vm388_vm1, %v419_v41, 0.0  ;;  %v442_v44 = vsel %vm388_vm1, %v420_v42, 0.0  ;;  %v387_v46 = vmul.f32 %v371_v22, %v371_v22 }
  0x17   : > { %2657 = vmatpush3.xpose.msk.msra.mxu0 %vm388_vm1, %v376_v9  ;;  %2662 = vmatpush3.xpose.msk.msra.mxu1 %vm388_vm1, %v377_v10  ;;  %v407_v47 = vsel %vm388_vm1, %v386_v45, 0.0  ;;  %v2947_v60 = vsub.s32 %v2941_v57, %v2943_v58  ;;  %vm1264_vm15 = vcmp.eq.s32.totalorder %v2943_v58, %v2941_v57 }
  0x18   : > { %2658 = vmatprep.mubr.msk.f32.mxu0 %vm2798_vm0, %v2797_v0  ;;  %2663 = vmatprep.mubr.msk.f32.mxu1 %vm2798_vm0, %v2797_v0  ;;  %v410_v48 = vsel %vm388_vm1, %v387_v46, 0.0 }
  0x19   : > { %2666 = vmatprep.subr.mxu0 %v2797_v0  ;;  %2671 = vmatprep.subr.mxu1 %v2797_v0 }
  0x1a   : > { %2659 = vmatmul.mubr.msk.f32.vlgmr.msra.gmra.mxu0 %vm388_vm1, %v368_v13  ;;  %2664 = vmatmul.mubr.msk.f32.vlgmr.msra.gmra.mxu1 %vm388_vm1, %v369_v14 }
  0x1b   : > { %2667 = vmatpush3.xpose.msk.msra.mxu0 %vm388_vm1, %v378_v15  ;;  %2672 = vmatpush3.xpose.msk.msra.mxu1 %vm388_vm1, %v379_v16 }
  0x1c   : > { %2668 = vmatprep.mubr.msk.f32.mxu0 %vm2798_vm0, %v2797_v0  ;;  %2673 = vmatprep.mubr.msk.f32.mxu1 %vm2798_vm0, %v2797_v0 }
  0x1d   : > { %422 = vadd.xlane.f32.xlu0 %v421_v17  ;;  %390 = vadd.xlane.f32.xlu1 %v389_v18 }
  0x1e   : > { %2669 = vmatmul.mubr.msk.f32.vlgmr.msra.gmra.mxu0 %vm388_vm1, %v370_v21  ;;  %2674 = vmatmul.mubr.msk.f32.vlgmr.msra.gmra.mxu1 %vm388_vm1, %v371_v22 }
  0x1f   : > { %2676 = vmatprep.subr.mxu0 %v2797_v0  ;;  %2681 = vmatprep.subr.mxu1 %v2797_v0 }
  0x20   : > { %2678 = vmatprep.mubr.msk.f32.mxu0 %vm2798_vm0, %v2797_v0  ;;  %2683 = vmatprep.mubr.msk.f32.mxu1 %vm2798_vm0, %v2797_v0 }
  0x21   : > { %425 = vadd.xlane.f32.xlu0 %v424_v23  ;;  %393 = vadd.xlane.f32.xlu1 %v392_v24 }
  0x25   : > { %428 = vadd.xlane.f32.xlu0 %v427_v27  ;;  %431 = vadd.xlane.f32.xlu1 %v430_v28 }
  0x29   : > { %396 = vadd.xlane.f32.xlu0 %v395_v31  ;;  %399 = vadd.xlane.f32.xlu1 %v398_v32 }
  0x2d   : > { %434 = vadd.xlane.f32.xlu0 %v433_v35  ;;  %437 = vadd.xlane.f32.xlu1 %v436_v36 }
  0x31   : > { %402 = vadd.xlane.f32.xlu0 %v401_v39  ;;  %405 = vadd.xlane.f32.xlu1 %v404_v40 }
  0x35   : > { %440 = vadd.xlane.f32.xlu0 %v439_v43  ;;  %443 = vadd.xlane.f32.xlu1 %v442_v44 }
  0x39   : > { %408 = vadd.xlane.f32.xlu0 %v407_v47  ;;  %411 = vadd.xlane.f32.xlu1 %v410_v48 }
  0xa6   : > { %v391_v49 = vpop.xlane.xlu1 %390  ;;  %v423_v50 = vpop.xlane.xlu0 %422 }
  0xa7   : > { %v1066_v63 = vrot.slane %v423_v50, %v2947_v60 }
  0xa9   : > { %v1158_v5 = vadd.f32 %v1066_v63, %v391_v49 }
  0xaa   : > { %v394_v51 = vpop.xlane.xlu1 %393  ;;  %v426_v52 = vpop.xlane.xlu0 %425 }
  0xab   : > { %v1070_v1 = vrot.slane %v426_v52, %v2947_v60 }
  0xad   : > { %v1159_v6 = vadd.f32 %v1070_v1, %v394_v51 }
  0xae   : > { %v432_v53 = vpop.xlane.xlu1 %431  ;;  %v429_v54 = vpop.xlane.xlu0 %428 }
  0xaf   : > { %v1074_v12 = vrot.slane %v429_v54, %v2947_v60  ;;  %v1078_v13 = vrot.slane %v432_v53, %v2947_v60 }
  0xb2   : > { %v400_v56 = vpop.xlane.xlu1 %399  ;;  %v397_v59 = vpop.xlane.xlu0 %396 }
  0xb3   : > { %v1160_v27 = vadd.f32 %v1074_v12, %v397_v59  ;;  %v1161_v28 = vadd.f32 %v1078_v13, %v400_v56 }
  0xb6   : > { %v438_v61 = vpop.xlane.xlu1 %437  ;;  %v435_v62 = vpop.xlane.xlu0 %434 }
  0xb7   : > { %v1082_v16 = vrot.slane %v435_v62, %v2947_v60  ;;  %v1086_v17 = vrot.slane %v438_v61, %v2947_v60 }
  0xba   : > { %v406_v2 = vpop.xlane.xlu1 %405  ;;  %v403_v9 = vpop.xlane.xlu0 %402 }
  0xbb   : > { %v1162_v30 = vadd.f32 %v1082_v16, %v403_v9  ;;  %v1163_v31 = vadd.f32 %v1086_v17, %v406_v2 }
  0xbe   : > { %v444_v24 = vpop.xlane.xlu1 %443  ;;  %v441_v29 = vpop.xlane.xlu0 %440 }
  0xbf   : > { %v1094_v38 = vrot.slane %v444_v24, %v2947_v60  ;;  %v1090_v48 = vrot.slane %v441_v29, %v2947_v60 }
  0xc2   : > { %v412_v45 = vpop.xlane.xlu1 %411  ;;  %v409_v49 = vpop.xlane.xlu0 %408 }
  0xc3   : > { %v1165_v50 = vadd.f32 %v1094_v38, %v412_v45  ;;  %v1164_v59 = vadd.f32 %v1090_v48, %v409_v49 }
  0xd2   : > { %v517_v3 = vpop.f32.mrf.mxu0  ;;  %v593_v4 = vpop.f32.mrf.mxu1 }
  0xd3   : > { %v1166_v7 = vmul.f32 2.0, %v517_v3  ;;  %v1167_v8 = vmul.f32 2.0, %v593_v4 }
  0xd4   : > { %v2640_v10 = vpop.f32.mrf.mxu0  ;;  %v2645_v11 = vpop.f32.mrf.mxu1 }
  0xd5   : > { %v1174_v14 = vsub.f32 %v1158_v5, %v1166_v7  ;;  %v1175_v15 = vsub.f32 %v1159_v6, %v1167_v8 }
  0xd6   : > { %v669_v18 = vpop.f32.mrf.mxu0  ;;  %v745_v19 = vpop.f32.mrf.mxu1 }
  0xd7   : > { %v1182_v20 = vmax.f32 %v1174_v14, 0.0  ;;  %v2955_v21 = vmax.f32 %v1175_v15, 0.0  ;;  %v1168_v22 = vmul.f32 2.0, %v669_v18  ;;  %v1169_v23 = vmul.f32 2.0, %v745_v19 }
  0xd8   : > { %v2650_v25 = vpop.f32.mrf.mxu0  ;;  %v2655_v26 = vpop.f32.mrf.mxu1 }
  0xd9   : > { %2757 = vrsqrt.f32 %v1182_v20  ;;  %v1176_v34 = vsub.f32 %v1160_v27, %v1168_v22  ;;  %v1177_v35 = vsub.f32 %v1161_v28, %v1169_v23  ;;  %vm1192_vm2 = vcmp.eq.f32.partialorder %v1182_v20, inf }
  0xda   : > { %2759 = vrsqrt.f32 %v2955_v21  ;;  %v821_v32 = vpop.f32.mrf.mxu0  ;;  %v897_v33 = vpop.f32.mrf.mxu1  ;;  %vm1194_vm3 = vcmp.eq.f32.partialorder %v1182_v20, 0.0  ;;  %v1195_v4 = vand.u32 2147483648, %v1182_v20  ;;  %vm1199_vm4 = vcmp.eq.f32.partialorder %v2955_v21, inf }
  0xdb   : > { %v1170_v36 = vmul.f32 2.0, %v821_v32  ;;  %v1171_v37 = vmul.f32 2.0, %v897_v33  ;;  %v1184_v41 = vmax.f32 %v1176_v34, 0.0  ;;  %v1185_v42 = vmax.f32 %v1177_v35, 0.0 }
  0xdc   : > { %v2660_v39 = vpop.f32.mrf.mxu0  ;;  %v2665_v40 = vpop.f32.mrf.mxu1  ;;  %v1202_v7 = vand.u32 2147483648, %v2955_v21  ;;  %vm1201_vm5 = vcmp.eq.f32.partialorder %v2955_v21, 0.0 }
  0xdd   : > { %v1178_v43 = vsub.f32 %v1162_v30, %v1170_v36  ;;  %v1179_v44 = vsub.f32 %v1163_v31, %v1171_v37  ;;  %2761 = vrsqrt.f32 %v1184_v41  ;;  %vm1206_vm6 = vcmp.eq.f32.partialorder %v1184_v41, inf }
  0xde   : > { %v973_v46 = vpop.f32.mrf.mxu0  ;;  %v1049_v47 = vpop.f32.mrf.mxu1  ;;  %2763 = vrsqrt.f32 %v1185_v42  ;;  %v1209_v16 = vand.u32 2147483648, %v1184_v41  ;;  %vm1208_vm7 = vcmp.eq.f32.partialorder %v1184_v41, 0.0  ;;  %vm1213_vm8 = vcmp.eq.f32.partialorder %v1185_v42, inf }
  0xdf   : > { %v1186_v53 = vmax.f32 %v1178_v43, 0.0  ;;  %v2960_v54 = vmax.f32 %v1179_v44, 0.0  ;;  %v1172_v55 = vmul.f32 2.0, %v973_v46  ;;  %v1173_v56 = vmul.f32 2.0, %v1049_v47 }
  0xe0   : > { %v2670_v51 = vpop.f32.mrf.mxu0  ;;  %v2675_v52 = vpop.f32.mrf.mxu1  ;;  %v1216_v19 = vand.u32 2147483648, %v1185_v42  ;;  %vm1215_vm9 = vcmp.eq.f32.partialorder %v1185_v42, 0.0 }
  0xe1   : > { %2765 = vrsqrt.f32 %v1186_v53  ;;  %v1180_v61 = vsub.f32 %v1164_v59, %v1172_v55  ;;  %v1181_v62 = vsub.f32 %v1165_v50, %v1173_v56  ;;  %vm1220_vm10 = vcmp.eq.f32.partialorder %v1186_v53, inf  ;;  %v1856_v56 = vld [vmem:[%s3414_s5] sm:$0xff] }
  0xe2   : > { %2767 = vrsqrt.f32 %v2960_v54  ;;  %vm1222_vm11 = vcmp.eq.f32.partialorder %v1186_v53, 0.0  ;;  %v1223_v28 = vand.u32 2147483648, %v1186_v53  ;;  %vm1227_vm12 = vcmp.eq.f32.partialorder %v2960_v54, inf }
  0xe3   : > { %v2963_v60 = vmax.f32 %v1180_v61, 0.0  ;;  %v2965_v3 = vmax.f32 %v1181_v62, 0.0  ;;  %v1230_v31 = vand.u32 2147483648, %v2960_v54  ;;  %vm1229_vm13 = vcmp.eq.f32.partialorder %v2960_v54, 0.0 }
  0xe4   : > { %v2547_v50 = vsel %vm1264_vm15, 1.0, %v2797_v0 }
  0xe5   : > { %2769 = vrsqrt.f32 %v2963_v60  ;;  %v1237_v40 = vand.u32 2147483648, %v2963_v60  ;;  %v1244_v43 = vand.u32 2147483648, %v2965_v3 }
  0xe6   : > { %v2758_v63 = vpop.eup %2757  ;;  %2771 = vrsqrt.f32 %v2965_v3 }
  0xe7   : > { %v2760_v1 = vpop.eup %2759  ;;  %v1191_v2 = vmul.f32 %v2758_v63, %v1182_v20 }
  0xe8   : > { %v1198_v5 = vmul.f32 %v2760_v1, %v2955_v21 }
  0xe9   : > { %v1193_v6 = vsel %vm1192_vm2, %v1182_v20, %v1191_v2  ;;  %vm1234_vm2 = vcmp.eq.f32.partialorder %v2963_v60, inf }
  0xea   : > { %v1196_v8 = vsel %vm1194_vm3, %v1195_v4, %v1193_v6  ;;  %v1200_v9 = vsel %vm1199_vm4, %v2955_v21, %v1198_v5  ;;  %v2762_v12 = vpop.eup %2761  ;;  %vm1236_vm3 = vcmp.eq.f32.partialorder %v2963_v60, 0.0  ;;  %vm1241_vm4 = vcmp.eq.f32.partialorder %v2965_v3, inf }
  0xeb   : > { %v1246_v10 = vadd.f32 1.0, %v1196_v8  ;;  %v1203_v11 = vsel %vm1201_vm5, %v1202_v7, %v1200_v9  ;;  %v2764_v14 = vpop.eup %2763  ;;  %v1205_v15 = vmul.f32 %v2762_v12, %v1184_v41  ;;  %vm1243_vm5 = vcmp.eq.f32.partialorder %v2965_v3, 0.0 }
  0xec   : > { %v1247_v13 = vadd.f32 1.0, %v1203_v11  ;;  %v1212_v17 = vmul.f32 %v2764_v14, %v1185_v42 }
  0xed   : > { %2773 = vrcp.f32 %v1246_v10  ;;  %v1207_v18 = vsel %vm1206_vm6, %v1184_v41, %v1205_v15  ;;  %vm1096_vm6 = vcmask 1042434  }
  0xee   : > { %2775 = vrcp.f32 %v1247_v13  ;;  %v2766_v20 = vpop.eup %2765  ;;  %v1210_v22 = vsel %vm1208_vm7, %v1209_v16, %v1207_v18  ;;  %v1214_v21 = vsel %vm1213_vm8, %v1185_v42, %v1212_v17  ;;  %vm1098_vm7 = vcmask 1043459  }
  0xef   : > { %v2768_v23 = vpop.eup %2767  ;;  %v1248_v24 = vadd.f32 1.0, %v1210_v22  ;;  %v1217_v25 = vsel %vm1215_vm9, %v1216_v19, %v1214_v21  ;;  %v1219_v26 = vmul.f32 %v2766_v20, %v1186_v53  ;;  %vm1100_vm8 = vcmask 1044484  }
  0xf0   : > { %v1249_v27 = vadd.f32 1.0, %v1217_v25  ;;  %v1226_v29 = vmul.f32 %v2768_v23, %v2960_v54  ;;  %vm1104_vm9 = vcmask 1046534  }
  0xf1   : > { %2777 = vrcp.f32 %v1248_v24  ;;  %v1221_v30 = vsel %vm1220_vm10, %v1186_v53, %v1219_v26  ;;  %vm1102_vm10 = vcmask 1045509  }
  0xf2   : > { %2779 = vrcp.f32 %v1249_v27  ;;  %v1224_v32 = vsel %vm1222_vm11, %v1223_v28, %v1221_v30  ;;  %v1228_v33 = vsel %vm1227_vm12, %v2960_v54, %v1226_v29  ;;  %v2770_v36 = vpop.eup %2769  ;;  %v1855_v54 = vld [vmem:[%s3413_s4] sm:$0xff]  ;;  %vm1106_vm11 = vcmask 1047559  }
  0xf3   : > { %v1250_v34 = vadd.f32 1.0, %v1224_v32  ;;  %v1231_v35 = vsel %vm1229_vm13, %v1230_v31, %v1228_v33  ;;  %v2772_v38 = vpop.eup %2771  ;;  %v1233_v39 = vmul.f32 %v2770_v36, %v2963_v60  ;;  %vm2156_vm12 = vcmask 523520  }
  0xf4   : > { %v1251_v37 = vadd.f32 1.0, %v1231_v35  ;;  %v1240_v41 = vmul.f32 %v2772_v38, %v2965_v3  ;;  %vm2193_vm13 = vcmask 785920  }
  0xf5   : > { %2781 = vrcp.f32 %v1250_v34  ;;  %v1235_v42 = vsel %vm1234_vm2, %v2963_v60, %v1233_v39  ;;  %v356_v39 = vld [vmem:[%s328_s19] sm:$0xff] }
  0xf6   : > { %2783 = vrcp.f32 %v1251_v37  ;;  %v1238_v45 = vsel %vm1236_vm3, %v1237_v40, %v1235_v42  ;;  %v1242_v46 = vsel %vm1241_vm4, %v2965_v3, %v1240_v41  ;;  %v357_v40 = vld [vmem:[%s328_s19 + $0x8] sm:$0xff]  ;;  %358 = vst [vmem:[%s3101_s22] sm:$0xff] %v356_v39 }
  0xf7   : > { %v1252_v48 = vadd.f32 1.0, %v1238_v45  ;;  %v1245_v49 = vsel %vm1243_vm5, %v1244_v43, %v1242_v46  ;;  %359 = vst [vmem:[%s3101_s22 + $0x8] sm:$0xff] %v357_v40 }
  0xf8   : > { %v1253_v51 = vadd.f32 1.0, %v1245_v49 }
  0xf9   : > { %2785 = vrcp.f32 %v1252_v48 }
  0xfa   : > { %v2774_v44 = vpop.eup %2773  ;;  %2787 = vrcp.f32 %v1253_v51 }
  0xfb   : > { %v2776_v47 = vpop.eup %2775  ;;  %2677 = vmatpush3.xpose.msk.msra.mxu0 %vm1267_vm14, %v2774_v44 }
  0xfc   : > { %2682 = vmatpush3.xpose.msk.msra.mxu1 %vm1267_vm14, %v2776_v47  ;;  %2686 = vmatprep.subr.mxu0 %v2797_v0 }
  0xfd   : > { %2691 = vmatprep.subr.mxu1 %v2797_v0 }
  0xfe   : > { %2679 = vmatmul.mubr.msk.f32.vlgmr.msra.gmra.mxu0 %vm1267_vm14, %v2547_v50  ;;  %v2778_v52 = vpop.eup %2777 }
  0xff   : > { %2684 = vmatmul.mubr.msk.f32.vlgmr.msra.gmra.mxu1 %vm1267_vm14, %v2547_v50  ;;  %2688 = vmatprep.mubr.msk.f32.mxu0 %vm2798_vm0, %v2797_v0  ;;  %v2780_v57 = vpop.eup %2779 }
 0x100   : > { %2693 = vmatprep.mubr.msk.f32.mxu1 %vm2798_vm0, %v2797_v0  ;;  %2687 = vmatpush3.xpose.msk.msra.mxu0 %vm1267_vm14, %v2778_v52 }
 0x101   : > { %2692 = vmatpush3.xpose.msk.msra.mxu1 %vm1267_vm14, %v2780_v57  ;;  %2696 = vmatprep.subr.mxu0 %v2797_v0 }
 0x102   : > { %2701 = vmatprep.subr.mxu1 %v2797_v0  ;;  %v2782_v58 = vpop.eup %2781 }
 0x103   : > { %2689 = vmatmul.mubr.msk.f32.vlgmr.msra.gmra.mxu0 %vm1267_vm14, %v2547_v50  ;;  %v2784_v53 = vpop.eup %2783 }
 0x104   : > { %2694 = vmatmul.mubr.msk.f32.vlgmr.msra.gmra.mxu1 %vm1267_vm14, %v2547_v50  ;;  %2697 = vmatpush3.xpose.msk.msra.mxu0 %vm1267_vm14, %v2782_v58 }
 0x105   : > { %2702 = vmatpush3.xpose.msk.msra.mxu1 %vm1267_vm14, %v2784_v53  ;;  %2698 = vmatprep.mubr.msk.f32.mxu0 %vm2798_vm0, %v2797_v0 }
 0x106   : > { %2703 = vmatprep.mubr.msk.f32.mxu1 %vm2798_vm0, %v2797_v0  ;;  %2706 = vmatprep.subr.mxu0 %v2797_v0  ;;  %v2786_v55 = vpop.eup %2785 }
 0x107   : > { %2699 = vmatmul.mubr.msk.f32.vlgmr.msra.gmra.mxu0 %vm1267_vm14, %v2547_v50  ;;  %2711 = vmatprep.subr.mxu1 %v2797_v0  ;;  %v2788_v59 = vpop.eup %2787 }
 0x108   : > { %2704 = vmatmul.mubr.msk.f32.vlgmr.msra.gmra.mxu1 %vm1267_vm14, %v2547_v50  ;;  %2708 = vmatprep.mubr.msk.f32.mxu0 %vm2798_vm0, %v2797_v0 }
 0x109   : > { %2713 = vmatprep.mubr.msk.f32.mxu1 %vm2798_vm0, %v2797_v0  ;;  %2707 = vmatpush3.xpose.msk.msra.mxu0 %vm1267_vm14, %v2786_v55  ;;  %vm1095_vm0 = vcmask 1041409  }
 0x10a   : > { %2712 = vmatpush3.xpose.msk.msra.mxu1 %vm1267_vm14, %v2788_v59  ;;  %2716 = vmatprep.subr.mxu0 %v1855_v54 }
 0x10b   : > { %2730 = vmatprep.subr.mxu1 %v1856_v56 }
 0x10c   : > { %2709 = vmatmul.mubr.msk.f32.vlgmr.msra.gmra.mxu0 %vm1267_vm14, %v2547_v50 }
 0x10d   : > { %2714 = vmatmul.mubr.msk.f32.vlgmr.msra.gmra.mxu1 %vm1267_vm14, %v2547_v50  ;;  %2718 = vmatprep.mubr.msk.f32.mxu0 %vm1267_vm14, %v2774_v44 }
 0x10e   : > { %2717 = vmatpush3.msra.mxu0 %v1855_v54  ;;  %2731 = vmatpush3.msra.mxu1 %v1856_v56 }
 0x110   : > { %2719 = vmatmul.mubr.msk.f32.vlgmr.msra.gmra.mxu0 %vm1267_vm14, %v2776_v47 }
 0x111   : > { %2721 = vmatprep.mubr.msk.f32.mxu0 %vm1267_vm14, %v2778_v52 }
 0x114   : > { %2722 = vmatmul.mubr.msk.f32.gmra.mxu0 %vm1267_vm14, %v2780_v57 }
 0x115   : > { %2724 = vmatprep.mubr.msk.f32.mxu0 %vm1267_vm14, %v2782_v58 }
 0x118   : > { %2725 = vmatmul.mubr.msk.f32.gmra.mxu0 %vm1267_vm14, %v2784_v53 }
 0x119   : > { %2727 = vmatprep.mubr.msk.f32.mxu0 %vm1267_vm14, %v2786_v55 }
 0x11c   : > { %2728 = vmatmul.mubr.msk.f32.gmra.mxu0 %vm1267_vm14, %v2788_v59 }
 0x1be   : > { %v1340_v0 = vpop.f32.mrf.mxu0 }
 0x1bf   : > { %v1413_v61 = vpop.f32.mrf.mxu1  ;;  %2732 = vmatprep.mubr.msk.f32.mxu1 %vm1267_vm14, %v1340_v0 }
 0x1c0   : > { %v2680_v62 = vpop.f32.mrf.mxu0  ;;  %2733 = vmatmul.mubr.msk.f32.vlgmr.msra.gmra.mxu1 %vm1267_vm14, %v1413_v61 }
 0x1c1   : > { %v2685_v63 = vpop.f32.mrf.mxu1 }
 0x1c3   : > { %v1486_v1 = vpop.f32.mrf.mxu0 }
 0x1c4   : > { %v1559_v2 = vpop.f32.mrf.mxu1  ;;  %2735 = vmatprep.mubr.msk.f32.mxu1 %vm1267_vm14, %v1486_v1 }
 0x1c5   : > { %v2690_v60 = vpop.f32.mrf.mxu0  ;;  %2736 = vmatmul.mubr.msk.f32.gmra.mxu1 %vm1267_vm14, %v1559_v2 }
 0x1c6   : > { %v2695_v3 = vpop.f32.mrf.mxu1 }
 0x1c7   : > { %v1632_v4 = vpop.f32.mrf.mxu0 }
 0x1c8   : > { %v1705_v5 = vpop.f32.mrf.mxu1  ;;  %2738 = vmatprep.mubr.msk.f32.mxu1 %vm1267_vm14, %v1632_v4 }
 0x1c9   : > { %v2700_v6 = vpop.f32.mrf.mxu0  ;;  %2739 = vmatmul.mubr.msk.f32.gmra.mxu1 %vm1267_vm14, %v1705_v5 }
 0x1ca   : > { %v2705_v7 = vpop.f32.mrf.mxu1 }
 0x1cc   : > { %v1778_v8 = vpop.f32.mrf.mxu0 }
 0x1cd   : > { %v1851_v9 = vpop.f32.mrf.mxu1  ;;  %2741 = vmatprep.mubr.msk.f32.mxu1 %vm1267_vm14, %v1778_v8 }
 0x1ce   : > { %v2710_v10 = vpop.f32.mrf.mxu0  ;;  %2742 = vmatmul.mubr.msk.f32.gmra.mxu1 %vm1267_vm14, %v1851_v9  ;;  %vm2230_vm14 = vcmask 1048320  }
 0x1cf   : > { %v2715_v11 = vpop.f32.mrf.mxu1 }
 0x1d0   : > { %v3052_v12 = vpop.f32.mrf.mxu0 }
 0x1d1   : > { %v2099_v13 = vrot.slane %v3052_v12, 7  ;;  %v2251_v14 = vrot.slane %v3052_v12, 3  ;;  %v2319_v16 = vrot.slane %v3052_v12, 5  ;;  %v2283_v19 = vrot.slane %v3052_v12, 4 }
 0x1d2   : > { %v3059_v15 = vpop.f32.mrf.mxu0  ;;  %v2177_v20 = vrot.slane %v3052_v12, 1  ;;  %v2214_v24 = vrot.slane %v3052_v12, 2  ;;  %v2355_v25 = vrot.slane %v3052_v12, 6 }
 0x1d3   : > { %v2318_v17 = vrot.slane %v3059_v15, 6  ;;  %v2282_v18 = vrot.slane %v3059_v15, 5  ;;  %v2139_v21 = vrot.slane %v3059_v15, 1  ;;  %v2176_v23 = vrot.slane %v3059_v15, 2 }
 0x1d4   : > { %v3066_v22 = vpop.f32.mrf.mxu0  ;;  %v3075_v26 = vsel %vm1095_vm0, %v2099_v13, %v3059_v15  ;;  %v2250_v27 = vrot.slane %v3059_v15, 4  ;;  %v2213_v28 = vrot.slane %v3059_v15, 3  ;;  %v2354_v29 = vrot.slane %v3059_v15, 7 }
 0x1d5   : > { %v2103_v30 = vrot.slane %v3066_v22, 5  ;;  %v2255_v31 = vrot.slane %v3066_v22, 1  ;;  %v2320_v33 = vsel %vm1095_vm0, %v2319_v16, %v2318_v17  ;;  %v2323_v34 = vrot.slane %v3066_v22, 3 }
 0x1d6   : > { %v3083_v32 = vpop.f32.mrf.mxu0  ;;  %v2284_v36 = vsel %vm1095_vm0, %v2283_v19, %v2282_v18  ;;  %v2287_v38 = vrot.slane %v3066_v22, 2  ;;  %v2140_v42 = vsel %vm1095_vm0, %v3052_v12, %v2139_v21  ;;  %v2143_v44 = vrot.slane %v3066_v22, 6 }
 0x1d7   : > { %v2321_v35 = vrot.slane %v3083_v32, 4  ;;  %v2285_v37 = vrot.slane %v3083_v32, 3  ;;  %v2141_v43 = vrot.slane %v3083_v32, 7  ;;  %v2178_v45 = vsel %vm1095_vm0, %v2177_v20, %v2176_v23 }
 0x1d8   : > { %v3103_v41 = vpop.f32.mrf.mxu0  ;;  %v2101_v46 = vrot.slane %v3083_v32, 6  ;;  %v2253_v47 = vrot.slane %v3083_v32, 2  ;;  %v2180_v57 = vrot.slane %v3066_v22, 7  ;;  %v2215_v58 = vsel %vm1095_vm0, %v2214_v24, %v2213_v28 }
 0x1d9   : > { %v2322_v48 = vsel %vm1096_vm6, %v2321_v35, %v2320_v33  ;;  %v2286_v49 = vsel %vm1096_vm6, %v2285_v37, %v2284_v36  ;;  %v2327_v51 = vrot.slane %v3103_v41, 1  ;;  %v2142_v52 = vsel %vm1096_vm6, %v2141_v43, %v2140_v42 }
 0x1da   : > { %v3116_v50 = vpop.f32.mrf.mxu0  ;;  %v2147_v55 = vrot.slane %v3103_v41, 4  ;;  %v2179_v56 = vsel %vm1096_vm6, %v3083_v32, %v2178_v45  ;;  %v2324_v0 = vsel %vm1098_vm7, %v2323_v34, %v2322_v48  ;;  %v2288_v61 = vsel %vm1098_vm7, %v2287_v38, %v2286_v49 }
 0x1db   : > { %v2325_v53 = vrot.slane %v3116_v50, 2  ;;  %v2289_v54 = vrot.slane %v3116_v50, 1  ;;  %v2145_v62 = vrot.slane %v3116_v50, 5  ;;  %v2182_v63 = vrot.slane %v3116_v50, 6 }
 0x1dc   : > { %v3127_v59 = vpop.f32.mrf.mxu0  ;;  %v2144_v3 = vsel %vm1098_vm7, %v2143_v44, %v2142_v52  ;;  %v2181_v7 = vsel %vm1098_vm7, %v2180_v57, %v2179_v56  ;;  %v2184_v8 = vrot.slane %v3103_v41, 5  ;;  %v2216_v34 = vrot.slane %v3083_v32, 1 }
 0x1dd   : > { %v2326_v1 = vsel %vm1100_vm8, %v2325_v53, %v2324_v0  ;;  %v2330_v2 = vrot.slane %v3127_v59, 7  ;;  %v2290_v60 = vsel %vm1100_vm8, %v2289_v54, %v2288_v61  ;;  %v2146_v6 = vsel %vm1100_vm8, %v2145_v62, %v2144_v3 }
 0x1de   : > { %v3137_v4 = vpop.f32.mrf.mxu0  ;;  %v2328_v5 = vsel %vm1102_vm10, %v2327_v51, %v2326_v1  ;;  %v2291_v10 = vsel %vm1102_vm10, %v3103_v41, %v2290_v60  ;;  %v2294_v13 = vrot.slane %v3127_v59, 6  ;;  %v2151_v18 = vrot.slane %v3127_v59, 2 }
 0x1df   : > { %v2329_v9 = vsel %vm1104_vm9, %v3137_v4, %v2328_v5  ;;  %v2292_v11 = vrot.slane %v3137_v4, 7  ;;  %v2149_v17 = vrot.slane %v3137_v4, 3  ;;  %v2183_v19 = vsel %vm1100_vm8, %v2182_v63, %v2181_v7  ;;  %v360_v7 = vld [vmem:[%s333_s30] sm:$0xff] }
 0x1e0   : > { %v2331_v16 = vsel %vm1106_vm11, %v2330_v2, %v2329_v9  ;;  %v2148_v21 = vsel %vm1102_vm10, %v2147_v55, %v2146_v6  ;;  %v2185_v23 = vsel %vm1102_vm10, %v2184_v8, %v2183_v19  ;;  %v2186_v24 = vrot.slane %v3137_v4, 4  ;;  %v361_v8 = vld [vmem:[%s333_s30 + $0x8] sm:$0xff]  ;;  %362 = vst [vmem:[%s3246_s10] sm:$0xff] %v360_v7 }
 0x1e1   : > { %2332 = vrot.lane.b32.xlu0 %v2331_v16, %s2799_s23  ;;  %v2293_v20 = vsel %vm1104_vm9, %v2292_v11, %v2291_v10  ;;  %v2150_v33 = vsel %vm1104_vm9, %v2149_v17, %v2148_v21  ;;  %v2219_v35 = vrot.slane %v3116_v50, 7  ;;  %v2105_v36 = vrot.slane %v3116_v50, 4  ;;  %363 = vst [vmem:[%s3246_s10 + $0x8] sm:$0xff] %v361_v8 }
 0x1e2   : > { %v2295_v28 = vsel %vm1106_vm11, %v2294_v13, %v2293_v20  ;;  %v2109_v37 = vrot.slane %v3137_v4, 2  ;;  %v2260_v38 = vrot.slane %v3137_v4, 6  ;;  %v2187_v39 = vsel %vm1104_vm9, %v2186_v24, %v2185_v23 }
 0x1e3   : > { %2296 = vrot.lane.b32.xlu1 %v2295_v28, %s2800_s26  ;;  %v2152_v40 = vsel %vm1106_vm11, %v2151_v18, %v2150_v33  ;;  %v2188_v42 = vrot.slane %v3127_v59, 3  ;;  %v2217_v43 = vsel %vm1096_vm6, %v2216_v34, %v2215_v58  ;;  %v2223_v44 = vrot.slane %v3137_v4, 5 }
 0x1e4   : > { %v2218_v45 = vsel %vm1098_vm7, %v3066_v22, %v2217_v43  ;;  %v2221_v48 = vrot.slane %v3103_v41, 6  ;;  %v2357_v49 = vrot.slane %v3083_v32, 5  ;;  %v2361_v51 = vrot.slane %v3116_v50, 3 }
 0x1e5   : > { %2153 = vrot.lane.b32.xlu0 %v2152_v40, %s2800_s26  ;;  %v2189_v52 = vsel %vm1106_vm11, %v2188_v42, %v2187_v39  ;;  %v2220_v57 = vsel %vm1100_vm8, %v2219_v35, %v2218_v45  ;;  %v2356_v58 = vsel %vm1095_vm0, %v2355_v25, %v2354_v29  ;;  %v2359_v53 = vrot.slane %v3066_v22, 4 }
 0x1e6   : > { %v2222_v54 = vsel %vm1102_vm10, %v2221_v48, %v2220_v57  ;;  %v2358_v55 = vsel %vm1096_vm6, %v2357_v49, %v2356_v58  ;;  %v2252_v56 = vsel %vm1095_vm0, %v2251_v14, %v2250_v27  ;;  %v2258_v0 = vrot.slane %v3103_v41, 7 }
 0x1e7   : > { %v2224_v61 = vsel %vm1104_vm9, %v2223_v44, %v2222_v54  ;;  %v2225_v62 = vrot.slane %v3127_v59, 4  ;;  %v2360_v25 = vsel %vm1098_vm7, %v2359_v53, %v2358_v55  ;;  %v2254_v29 = vsel %vm1096_vm6, %v2253_v47, %v2252_v56 }
 0x1e8   : > { %v2362_v15 = vsel %vm1100_vm8, %v2361_v51, %v2360_v25  ;;  %v2365_v12 = vrot.slane %v3137_v4, 1  ;;  %v2256_v14 = vsel %vm1098_vm7, %v2255_v31, %v2254_v29  ;;  %v2102_v27 = vsel %vm1096_vm6, %v2101_v46, %v3075_v26 }
 0x1e9   : > { %2190 = vrot.lane.b32.xlu0 %v2189_v52, %s2799_s23  ;;  %v2363_v63 = vrot.slane %v3103_v41, 2  ;;  %v2257_v47 = vsel %vm1100_vm8, %v3116_v50, %v2256_v14  ;;  %v2104_v1 = vsel %vm1098_vm7, %v2103_v30, %v2102_v27  ;;  %v2107_v2 = vrot.slane %v3103_v41, 3 }
 0x1ea   : > { %v2226_v31 = vsel %vm1106_vm11, %v2225_v62, %v2224_v61  ;;  %v2259_v60 = vsel %vm1102_vm10, %v2258_v0, %v2257_v47  ;;  %v2262_v32 = vrot.slane %v3127_v59, 5  ;;  %v2106_v26 = vsel %vm1100_vm8, %v2105_v36, %v2104_v1 }
 0x1eb   : > { %v2364_v46 = vsel %vm1102_vm10, %v2363_v63, %v2362_v15  ;;  %v2261_v50 = vsel %vm1104_vm9, %v2260_v38, %v2259_v60  ;;  %v2108_v22 = vsel %vm1102_vm10, %v2107_v2, %v2106_v26  ;;  %v2111_v30 = vrot.slane %v3127_v59, 1 }
 0x1ec   : > { %v2366_v41 = vsel %vm1104_vm9, %v2365_v12, %v2364_v46  ;;  %v2263_v3 = vsel %vm1106_vm11, %v2262_v32, %v2261_v50  ;;  %v2110_v4 = vsel %vm1104_vm9, %v2109_v37, %v2108_v22 }
 0x1ed   : > { %2227 = vrot.lane.b32.xlu0 %v2226_v31, %s2801_s27  ;;  %2265 = vst.msk [vmem:[%s3101_s22 + $0x18] sm:$0xff] %vm388_vm1, %v2263_v3  ;;  %v2112_v5 = vsel %vm1106_vm11, %v2111_v30, %v2110_v4  ;;  %v2367_v6 = vsel %vm1106_vm11, %v3127_v59, %v2366_v41 }
 0x1ee   : > { %2114 = vst.msk [vmem:[%s3101_s22 + $0x10] sm:$0xff] %vm388_vm1, %v2112_v5 }
 0x1f1   : > { %2368 = vrot.lane.b32.xlu0 %v2367_v6, %s2801_s27 }
 0x253   : > { %v2333_v59 = vpop.permute.xlu0 %2332 }
 0x255   : > { %v2297_v9 = vpop.permute.xlu1 %2296 }
 0x256   : > { %2299 = vst.msk [vmem:[%s3101_s22 + $0x18] sm:$0xff] %vm2156_vm12, %v2297_v9 }
 0x257   : > { %v2154_v10 = vpop.permute.xlu0 %2153  ;;  %2335 = vst.msk [vmem:[%s3101_s22 + $0x18] sm:$0xff] %vm2193_vm13, %v2333_v59 }
 0x258   : > { %2157 = vst.msk [vmem:[%s3101_s22 + $0x10] sm:$0xff] %vm2156_vm12, %v2154_v10 }
 0x25b   : > { %v2191_v11 = vpop.permute.xlu0 %2190 }
 0x25c   : > { %2194 = vst.msk [vmem:[%s3101_s22 + $0x10] sm:$0xff] %vm2193_vm13, %v2191_v11 }
 0x25f   : > { %v2228_v13 = vpop.permute.xlu0 %2227 }
 0x260   : > { %2231 = vst.msk [vmem:[%s3101_s22 + $0x10] sm:$0xff] %vm2230_vm14, %v2228_v13 }
 0x263   : > { %v2369_v16 = vpop.permute.xlu0 %2368 }
 0x264   : > { %2371 = vst.msk [vmem:[%s3101_s22 + $0x18] sm:$0xff] %vm2230_vm14, %v2369_v16 }
 0x280   : > { %v2734_v17 = vpop.f32.mrf.mxu1 }
 0x281   : > { %v2123_v19 = vrot.slane %v2734_v17, 7  ;;  %v2267_v24 = vrot.slane %v2734_v17, 3  ;;  %v2337_v33 = vrot.slane %v2734_v17, 5  ;;  %v2301_v36 = vrot.slane %v2734_v17, 4 }
 0x282   : > { %v2052_v18 = vpop.f32.mrf.mxu1  ;;  %v2196_v43 = vrot.slane %v2734_v17, 1  ;;  %v2233_v44 = vrot.slane %v2734_v17, 2  ;;  %v2373_v52 = vrot.slane %v2734_v17, 6 }
 0x283   : > { %v2336_v21 = vrot.slane %v2052_v18, 6  ;;  %v2158_v23 = vrot.slane %v2052_v18, 1  ;;  %v2266_v28 = vrot.slane %v2052_v18, 4  ;;  %v2300_v34 = vrot.slane %v2052_v18, 5 }
 0x284   : > { %v2195_v37 = vrot.slane %v2052_v18, 2  ;;  %v2232_v38 = vrot.slane %v2052_v18, 3  ;;  %v2372_v39 = vrot.slane %v2052_v18, 7  ;;  %v3269_v45 = vsel %vm1095_vm0, %v2123_v19, %v2052_v18 }
 0x285   : > { %v3262_v20 = vpop.f32.mrf.mxu1  ;;  %v2338_v49 = vsel %vm1095_vm0, %v2337_v33, %v2336_v21  ;;  %v2159_v51 = vsel %vm1095_vm0, %v2734_v17, %v2158_v23  ;;  %v2302_v58 = vsel %vm1095_vm0, %v2301_v36, %v2300_v34  ;;  %v3279_v54 = vsel %vm1095_vm0, %v2267_v24, %v2266_v28 }
 0x286   : > { %v2341_v56 = vrot.slane %v3262_v20, 3  ;;  %v2197_v0 = vsel %vm1095_vm0, %v2196_v43, %v2195_v37  ;;  %v2234_v61 = vsel %vm1095_vm0, %v2233_v44, %v2232_v38  ;;  %v2374_v62 = vsel %vm1095_vm0, %v2373_v52, %v2372_v39 }
 0x287   : > { %v3264_v35 = vpop.f32.mrf.mxu1  ;;  %v2162_v15 = vrot.slane %v3262_v20, 6  ;;  %v2305_v63 = vrot.slane %v3262_v20, 2  ;;  %v2199_v47 = vrot.slane %v3262_v20, 7  ;;  %v2127_v30 = vrot.slane %v3262_v20, 5 }
 0x288   : > { %v2339_v40 = vrot.slane %v3264_v35, 4  ;;  %v2160_v42 = vrot.slane %v3264_v35, 7  ;;  %v2303_v53 = vrot.slane %v3264_v35, 3  ;;  %v2198_v31 = vsel %vm1096_vm6, %v3264_v35, %v2197_v0 }
 0x289   : > { %v3271_v48 = vpop.f32.mrf.mxu1  ;;  %v2235_v60 = vrot.slane %v3264_v35, 1  ;;  %v2271_v41 = vrot.slane %v3262_v20, 1  ;;  %v2125_v5 = vrot.slane %v3264_v35, 6  ;;  %v2200_v59 = vsel %vm1098_vm7, %v2199_v47, %v2198_v31 }
 0x28a   : > { %v2340_v57 = vsel %vm1096_vm6, %v2339_v40, %v2338_v49  ;;  %v2161_v29 = vsel %vm1096_vm6, %v2160_v42, %v2159_v51  ;;  %v2345_v27 = vrot.slane %v3271_v48, 1  ;;  %v2304_v2 = vsel %vm1096_vm6, %v2303_v53, %v2302_v58 }
 0x28b   : > { %v3281_v55 = vpop.f32.mrf.mxu1  ;;  %v2342_v14 = vsel %vm1098_vm7, %v2341_v56, %v2340_v57  ;;  %v2163_v46 = vsel %vm1098_vm7, %v2162_v15, %v2161_v29  ;;  %v2166_v7 = vrot.slane %v3271_v48, 4  ;;  %v2306_v8 = vsel %vm1098_vm7, %v2305_v63, %v2304_v2 }
 0x28c   : > { %v2343_v25 = vrot.slane %v3281_v55, 2  ;;  %v2164_v12 = vrot.slane %v3281_v55, 5  ;;  %v2307_v50 = vrot.slane %v3281_v55, 1  ;;  %v2201_v22 = vrot.slane %v3281_v55, 6 }
 0x28d   : > { %v2236_v11 = vsel %vm1096_vm6, %v2235_v60, %v2234_v61  ;;  %v2238_v13 = vrot.slane %v3281_v55, 7  ;;  %v2269_v21 = vrot.slane %v3264_v35, 2  ;;  %v2203_v28 = vrot.slane %v3271_v48, 5 }
 0x28e   : > { %v2344_v1 = vsel %vm1100_vm8, %v2343_v25, %v2342_v14  ;;  %v3300_v32 = vpop.f32.mrf.mxu1  ;;  %v2165_v4 = vsel %vm1100_vm8, %v2164_v12, %v2163_v46  ;;  %v2308_v18 = vsel %vm1100_vm8, %v2307_v50, %v2306_v8  ;;  %v2202_v19 = vsel %vm1100_vm8, %v2201_v22, %v2200_v59 }
 0x28f   : > { %v2346_v26 = vsel %vm1102_vm10, %v2345_v27, %v2344_v1  ;;  %v2348_v3 = vrot.slane %v3300_v32, 7  ;;  %v2167_v17 = vsel %vm1102_vm10, %v2166_v7, %v2165_v4  ;;  %v2129_v33 = vrot.slane %v3281_v55, 4 }
 0x290   : > { %v3311_v6 = vpop.f32.mrf.mxu1  ;;  %v2170_v34 = vrot.slane %v3300_v32, 2  ;;  %v2237_v36 = vsel %vm1098_vm7, %v3262_v20, %v2236_v11  ;;  %v2375_v37 = vrot.slane %v3264_v35, 5  ;;  %v2309_v38 = vsel %vm1102_vm10, %v3271_v48, %v2308_v18 }
 0x291   : > { %v2347_v9 = vsel %vm1104_vm9, %v3311_v6, %v2346_v26  ;;  %v2168_v10 = vrot.slane %v3311_v6, 3  ;;  %v2310_v24 = vrot.slane %v3311_v6, 7  ;;  %v2312_v39 = vrot.slane %v3300_v32, 6 }
 0x292   : > { %v2349_v16 = vsel %vm1106_vm11, %v2348_v3, %v2347_v9  ;;  %v2204_v40 = vsel %vm1102_vm10, %v2203_v28, %v2202_v19  ;;  %v2239_v42 = vsel %vm1100_vm8, %v2238_v13, %v2237_v36  ;;  %v2133_v43 = vrot.slane %v3311_v6, 2 }
 0x293   : > { %2350 = vrot.lane.b32.xlu1 %v2349_v16, %s2799_s23  ;;  %v2169_v23 = vsel %vm1104_vm9, %v2168_v10, %v2167_v17  ;;  %v2205_v49 = vrot.slane %v3311_v6, 4  ;;  %v2126_v51 = vsel %vm1096_vm6, %v2125_v5, %v3269_v45  ;;  %v2276_v35 = vrot.slane %v3311_v6, 6 }
 0x294   : > { %v2171_v44 = vsel %vm1106_vm11, %v2170_v34, %v2169_v23  ;;  %v2311_v52 = vsel %vm1104_vm9, %v2310_v24, %v2309_v38  ;;  %v2128_v57 = vsel %vm1098_vm7, %v2127_v30, %v2126_v51  ;;  %v2131_v58 = vrot.slane %v3271_v48, 3 }
 0x295   : > { %v2242_v53 = vrot.slane %v3311_v6, 5  ;;  %v2130_v56 = vsel %vm1100_vm8, %v2129_v33, %v2128_v57  ;;  %v2270_v0 = vsel %vm1096_vm6, %v2269_v21, %v3279_v54  ;;  %v2274_v61 = vrot.slane %v3271_v48, 7 }
 0x296   : > { %v2376_v45 = vsel %vm1096_vm6, %v2375_v37, %v2374_v62  ;;  %v2132_v25 = vsel %vm1102_vm10, %v2131_v58, %v2130_v56  ;;  %v2135_v29 = vrot.slane %v3300_v32, 1  ;;  %v2272_v15 = vsel %vm1098_vm7, %v2271_v41, %v2270_v0 }
 0x297   : > { %2172 = vrot.lane.b32.xlu1 %v2171_v44, %s2800_s26  ;;  %v2313_v12 = vsel %vm1106_vm11, %v2312_v39, %v2311_v52  ;;  %v2206_v14 = vsel %vm1104_vm9, %v2205_v49, %v2204_v40  ;;  %v2134_v27 = vsel %vm1104_vm9, %v2133_v43, %v2132_v25  ;;  %v2273_v54 = vsel %vm1100_vm8, %v3281_v55, %v2272_v15 }
 0x298   : > { %v2379_v62 = vrot.slane %v3281_v55, 3  ;;  %v2136_v63 = vsel %vm1106_vm11, %v2135_v29, %v2134_v27  ;;  %v2275_v47 = vsel %vm1102_vm10, %v2274_v61, %v2273_v54  ;;  %v2278_v1 = vrot.slane %v3300_v32, 5 }
 0x299   : > { %v2207_v2 = vrot.slane %v3300_v32, 3  ;;  %v2240_v31 = vrot.slane %v3271_v48, 6  ;;  %v2377_v60 = vrot.slane %v3262_v20, 4  ;;  %2138 = vst.msk [vmem:[%s3246_s10 + $0x10] sm:$0xff] %vm388_vm1, %v2136_v63  ;;  %v2277_v26 = vsel %vm1104_vm9, %v2276_v35, %v2275_v47 }
 0x29a   : > { %v2279_v46 = vsel %vm1106_vm11, %v2278_v1, %v2277_v26  ;;  %v2383_v41 = vrot.slane %v3311_v6, 1  ;;  %v2244_v3 = vrot.slane %v3300_v32, 4  ;;  %v2381_v4 = vrot.slane %v3271_v48, 2 }
 0x29b   : > { %2314 = vrot.lane.b32.xlu1 %v2313_v12, %s2800_s26  ;;  %v2208_v55 = vsel %vm1106_vm11, %v2207_v2, %v2206_v14  ;;  %v2241_v50 = vsel %vm1102_vm10, %v2240_v31, %v2239_v42  ;;  %v2378_v22 = vsel %vm1098_vm7, %v2377_v60, %v2376_v45  ;;  %2281 = vst.msk [vmem:[%s3246_s10 + $0x18] sm:$0xff] %vm388_vm1, %v2279_v46 }
 0x29c   : > { %v2243_v20 = vsel %vm1104_vm9, %v2242_v53, %v2241_v50  ;;  %v2380_v30 = vsel %vm1100_vm8, %v2379_v62, %v2378_v22 }
 0x29d   : > { %v2245_v5 = vsel %vm1106_vm11, %v2244_v3, %v2243_v20  ;;  %v2382_v7 = vsel %vm1102_vm10, %v2381_v4, %v2380_v30 }
 0x29e   : > { %v2384_v8 = vsel %vm1104_vm9, %v2383_v41, %v2382_v7 }
 0x29f   : > { %2209 = vrot.lane.b32.xlu1 %v2208_v55, %s2799_s23  ;;  %v2385_v59 = vsel %vm1106_vm11, %v3300_v32, %v2384_v8 }
 0x2a3   : > { %2246 = vrot.lane.b32.xlu1 %v2245_v5, %s2801_s27 }
 0x2a7   : > { %2386 = vrot.lane.b32.xlu1 %v2385_v59, %s2801_s27 }
 0x305   : > { %v2351_v6 = vpop.permute.xlu1 %2350 }
 0x309   : > { %v2173_v9 = vpop.permute.xlu1 %2172 }
 0x30a   : > { %2175 = vst.msk [vmem:[%s3246_s10 + $0x10] sm:$0xff] %vm2156_vm12, %v2173_v9 }
 0x30d   : > { %v2315_v48 = vpop.permute.xlu1 %2314 }
 0x30e   : > { %2317 = vst.msk [vmem:[%s3246_s10 + $0x18] sm:$0xff] %vm2156_vm12, %v2315_v48 }
 0x30f   : > { %2353 = vst.msk [vmem:[%s3246_s10 + $0x18] sm:$0xff] %vm2193_vm13, %v2351_v6 }
 0x311   : > { %v2210_v10 = vpop.permute.xlu1 %2209 }
 0x312   : > { %2212 = vst.msk [vmem:[%s3246_s10 + $0x10] sm:$0xff] %vm2193_vm13, %v2210_v10 }
 0x315   : > { %v2247_v11 = vpop.permute.xlu1 %2246 }
 0x316   : > { %2249 = vst.msk [vmem:[%s3246_s10 + $0x10] sm:$0xff] %vm2230_vm14, %v2247_v11 }
 0x319   : > { %v2387_v13 = vpop.permute.xlu1 %2386 }
 0x31a   : > { %2389 = vst.msk [vmem:[%s3246_s10 + $0x18] sm:$0xff] %vm2230_vm14, %v2387_v13 }
 0x31b PF: > { %s18_s24 = sadd.s32 1, %s2795_s24  }
 0x31c   : > { %p15_p5 = scmp.ge.s32.totalorder %s18_s24, 4  }
 0x31e   :  { %17 = sbr.rel (!%p15_p5) target bundleno = 1 (0x1), region = 95 }

</bundles_post_ra>
